<compile_context>
chip_gen: v6e
topology: v6e:2x2x1
jax: 0.10.0
libtpu: 0.0.40
codegen_flags: <defaults>
</compile_context>

<pallas_src>
import functools

import jax
import jax.numpy as jnp
from jax.experimental import pallas as pl
from jax.experimental.pallas import tpu as pltpu


# ----------------------------- hardware probing --------------------------------

def _chip_generation():
    """Best-effort TPU generation from the device kind string."""
    try:
        kind = jax.devices()[0].device_kind.lower()
    except Exception:
        return 6
    for gen in (7, 6, 5, 4, 3):
        if (f"v{gen}" in kind) or (f"tpu{gen}" in kind):
            return gen
    return 6


def _physical_vmem_bytes(gen):
    try:
        v = int(pltpu.get_tpu_info().vmem_capacity_bytes)
        if v > 0:
            return v
    except Exception:
        pass
    return (64 << 20) if gen >= 7 else (128 << 20)


def _round_up(x, m):
    return (x + m - 1) // m * m


# ----------------------------- Pallas kernels ----------------------------------

def _agg_fused_kernel(a_ref, x_ref, w_ref, b_ref, o_ref, acc_ref, *,
                      apply_tanh, tanh_in_bf16):
    """acc += A_tile @ X_block; at last K step: o = [tanh]((acc) @ W + b)."""
    k = pl.program_id(1)

    @pl.when(k == 0)
    def _():
        acc_ref[...] = jnp.zeros_like(acc_ref)

    acc_ref[...] += jnp.dot(a_ref[...], x_ref[...],
                            preferred_element_type=jnp.float32)

    @pl.when(k == pl.num_programs(1) - 1)
    def _():
        y = jnp.dot(acc_ref[...].astype(w_ref.dtype), w_ref[...],
                    preferred_element_type=jnp.float32)
        y = y + b_ref[...].astype(jnp.float32)
        if apply_tanh:
            if tanh_in_bf16:            # bf16 EUP on v6e/v7x
                y = jnp.tanh(y.astype(jnp.bfloat16)).astype(jnp.float32)
            else:                        # f32 EUP path (v5e)
                y = jnp.tanh(y)
        o_ref[...] = y.astype(o_ref.dtype)


def _agg_bias_kernel(a_ref, x_ref, b_ref, o_ref, acc_ref, *,
                     apply_tanh, tanh_in_bf16):
    """acc += A_tile @ H_block; at last K step: o = [tanh](acc + b)."""
    k = pl.program_id(1)

    @pl.when(k == 0)
    def _():
        acc_ref[...] = jnp.zeros_like(acc_ref)

    acc_ref[...] += jnp.dot(a_ref[...], x_ref[...],
                            preferred_element_type=jnp.float32)

    @pl.when(k == pl.num_programs(1) - 1)
    def _():
        y = acc_ref[...] + b_ref[...].astype(jnp.float32)
        if apply_tanh:
            if tanh_in_bf16:
                y = jnp.tanh(y.astype(jnp.bfloat16)).astype(jnp.float32)
            else:
                y = jnp.tanh(y)
        o_ref[...] = y.astype(o_ref.dtype)


def _mm_kernel(x_ref, w_ref, o_ref):
    o_ref[...] = jnp.dot(x_ref[...], w_ref[...],
                         preferred_element_type=jnp.float32).astype(o_ref.dtype)


# ------------------------------ kernel wrappers ---------------------------------

def gcn_aggregate(a, x, w, b, *, apply_tanh, out_dtype, tm, tk,
                  tanh_in_bf16, vmem_cap):
    """Y = [tanh]((A @ X) [@ W] + b), contraction over A's columns K-tiled."""
    m, n_nodes = a.shape
    kx, f_x = x.shape
    assert kx == n_nodes and m % tm == 0 and n_nodes % tk == 0
    fuse_w = w is not None
    f_out = w.shape[1] if fuse_w else f_x
    grid = (m // tm, n_nodes // tk)

    in_specs = [
        pl.BlockSpec((tm, tk), lambda i, k: (i, k)),    # streamed A tile
        pl.BlockSpec((tk, f_x), lambda i, k: (k, 0)),   # streamed X row-block
    ]
    args = [a, x]
    if fuse_w:
        # W stays resident (constant index_map); <=0.5 MiB bf16, so double
        # buffering it is negligible after K-tiling removed the resident X.
        in_specs.append(pl.BlockSpec((w.shape[0], f_out), lambda i, k: (0, 0)))
        args.append(w)
        kernel = functools.partial(_agg_fused_kernel, apply_tanh=apply_tanh,
                                   tanh_in_bf16=tanh_in_bf16)
    else:
        kernel = functools.partial(_agg_bias_kernel, apply_tanh=apply_tanh,
                                   tanh_in_bf16=tanh_in_bf16)
    b2d = b.reshape(1, f_out)
    in_specs.append(pl.BlockSpec((1, f_out), lambda i, k: (0, 0)))  # resident bias
    args.append(b2d)

    o_bytes = jnp.dtype(out_dtype).itemsize
    # double-buffered A/X tiles + resident W/bias + f32 accumulator + output tile
    vmem_need = (2 * tm * tk * 2 + 2 * tk * f_x * 2
                 + (2 * w.shape[0] * f_out * 2 if fuse_w else 0)
                 + 2 * f_out * 4
                 + tm * f_x * 4
                 + 2 * tm * f_out * o_bytes)
    vmem_limit = int(min(max(int(vmem_need * 1.5) + (2 << 20), 4 << 20), vmem_cap))

    flops = 2 * m * n_nodes * f_x + (2 * m * w.shape[0] * f_out if fuse_w else 0)
    bytes_accessed = (m * n_nodes * 2 + n_nodes * f_x * 2
                      + (w.shape[0] * f_out * 2 if fuse_w else 0)
                      + f_out * 4 + m * f_out * o_bytes)
    cost = pl.CostEstimate(flops=flops,
                           transcendentals=(m * f_out) if apply_tanh else 0,
                           bytes_accessed=bytes_accessed)

    return pl.pallas_call(
        kernel,
        out_shape=jax.ShapeDtypeStruct((m, f_out), out_dtype),
        grid=grid,
        in_specs=in_specs,
        out_specs=pl.BlockSpec((tm, f_out), lambda i, k: (i, 0)),
        scratch_shapes=[pltpu.VMEM((tm, f_x), jnp.float32)],
        compiler_params=pltpu.CompilerParams(
            dimension_semantics=("parallel", "arbitrary"),
            vmem_limit_bytes=vmem_limit,
        ),
        cost_estimate=cost,
    )(*args)


def row_tiled_matmul(x, w, *, out_dtype, tm, vmem_cap):
    """H = X @ W, row-tiled over X's rows, W resident.  Mem-bound helper for the
    transform-first branch; uses a large row tile to amortize per-step overhead."""
    m, kdim = x.shape
    k2, n = w.shape
    assert kdim == k2 and m % tm == 0
    grid = (m // tm,)

    o_bytes = jnp.dtype(out_dtype).itemsize
    vmem_need = 2 * tm * kdim * 2 + 2 * kdim * n * 2 + 2 * tm * n * o_bytes
    vmem_limit = int(min(max(int(vmem_need * 1.5) + (2 << 20), 4 << 20), vmem_cap))

    cost = pl.CostEstimate(
        flops=2 * m * kdim * n,
        transcendentals=0,
        bytes_accessed=m * kdim * 2 + kdim * n * 2 + m * n * o_bytes,
    )

    return pl.pallas_call(
        _mm_kernel,
        out_shape=jax.ShapeDtypeStruct((m, n), out_dtype),
        grid=grid,
        in_specs=[pl.BlockSpec((tm, kdim), lambda i: (i, 0)),
                  pl.BlockSpec((kdim, n), lambda i: (0, 0))],
        out_specs=pl.BlockSpec((tm, n), lambda i: (i, 0)),
        compiler_params=pltpu.CompilerParams(
            dimension_semantics=("parallel",),
            vmem_limit_bytes=vmem_limit,
        ),
        cost_estimate=cost,
    )(x, w)


def gcn_layer(a, x, w, b, *, apply_tanh, out_dtype, tm, tk, tm_big,
              tanh_in_bf16, vmem_cap):
    """One GCNConv layer (+ optional tanh)."""
    f_in_p, f_out_p = w.shape
    if f_in_p <= f_out_p:
        # Aggregate first, fully fused: Y = [tanh]((A @ X) @ W + b) in ONE call;
        # the N^2 matmul contracts over the smaller F_in.
        return gcn_aggregate(a, x, w, b, apply_tanh=apply_tanh,
                             out_dtype=out_dtype, tm=tm, tk=tk,
                             tanh_in_bf16=tanh_in_bf16, vmem_cap=vmem_cap)
    # Transform first: H = X @ W (mem-bound, large row tile), then the K-tiled
    # aggregation with bias/tanh epilogue; the N^2 matmul contracts over F_out.
    h = row_tiled_matmul(x, w, out_dtype=jnp.bfloat16, tm=tm_big, vmem_cap=vmem_cap)
    return gcn_aggregate(a, h, None, b, apply_tanh=apply_tanh,
                         out_dtype=out_dtype, tm=tm, tk=tk,
                         tanh_in_bf16=tanh_in_bf16, vmem_cap=vmem_cap)


# ------------------------------ glue (JAX) --------------------------------------

def build_norm_adj(edge_index, num_nodes):
    """Dense D^{-1/2}(A + I)D^{-1/2} (PyG gcn_norm semantics)."""
    src = edge_index[0]
    dst = edge_index[1]
    adj = jnp.zeros((num_nodes, num_nodes), jnp.float32)
    # scatter-ADD so duplicate edges are counted with multiplicity (PyG parity)
    adj = adj.at[dst, src].add(1.0)
    # add_remaining_self_loops: only add a self-loop where one is missing
    diag = jnp.diagonal(adj)
    adj = adj + jnp.diag(jnp.where(diag == 0.0, 1.0, 0.0))
    deg = adj.sum(axis=1)
    dinv = jax.lax.rsqrt(jnp.maximum(deg, 1e-12))
    return adj * dinv[:, None] * dinv[None, :]


def xavier_uniform(key, fan_in, fan_out):
    bound = jnp.sqrt(6.0 / (fan_in + fan_out))
    return jax.random.uniform(key, (fan_in, fan_out), jnp.float32,
                              minval=-bound, maxval=bound)


class GCNFlowModelPallas:
    """JAX/Pallas port of GCNFlowModel with conv_type='GCN'."""

    def __init__(self, edge_index, num_nodes, in_features, out_features,
                 depth=2, width=512, seed=0):
        self.num_nodes = num_nodes
        self.out_features = out_features

        gen = _chip_generation()
        phys_vmem = _physical_vmem_bytes(gen)
        # leave compiler headroom: ~48 MiB on v7x, ~96 MiB on v5e/v6e
        self.vmem_cap = int(phys_vmem * 3 // 4)
        self.tanh_in_bf16 = gen >= 6           # bf16 EUP on v6e/v7x; f32 on v5e

        # ------- node-dimension tiling -------
        n8 = _round_up(num_nodes, 8)
        if n8 > 512:
            # big graphs: stream (TM,TK) A tiles; smaller TM on v7x (64 MiB VMEM)
            tm = 256 if gen >= 7 else 512
            tk = 512
            self.n_pad = _round_up(num_nodes, 512)     # multiple of both tm and tk
        else:
            # small graphs: ensure >= 2 "parallel" row tiles when possible so both
            # v7x TensorCores get work (harmless sequential steps on 1-TC chips)
            tm = n8 if n8 < 16 else _round_up(n8 // 2, 8)
            self.n_pad = _round_up(n8, tm)
            tk = self.n_pad                             # single K step
        self.tm, self.tk = tm, tk
        # larger row tile for the mem-bound H = X @ W matmul (amortize step overhead)
        tm_big = tm
        while tm_big * 2 <= 2048 and self.n_pad % (tm_big * 2) == 0:
            tm_big *= 2
        self.tm_big = tm_big

        self.f_in_pad = _round_up(in_features, 128)

        a = build_norm_adj(edge_index, num_nodes)
        a_p = jnp.zeros((self.n_pad, self.n_pad), jnp.float32)
        a_p = a_p.at[:num_nodes, :num_nodes].set(a)
        self.a_norm_p = a_p.astype(jnp.bfloat16)        # bf16 MXU operand

        key = jax.random.PRNGKey(seed)
        dims = [in_features] + [width] * depth + [out_features]
        self.weights_p = []
        self.biases_p = []
        for li in range(len(dims) - 1):
            f_in, f_out = dims[li], dims[li + 1]
            f_in_p, f_out_p = _round_up(f_in, 128), _round_up(f_out, 128)
            key, wk = jax.random.split(key)
            w = xavier_uniform(wk, f_in, f_out)
            w_p = jnp.zeros((f_in_p, f_out_p), jnp.float32).at[:f_in, :f_out].set(w)
            self.weights_p.append(w_p.astype(jnp.bfloat16))
            # PyG GCNConv bias init = zeros
            self.biases_p.append(jnp.zeros((f_out_p,), jnp.float32))

    def _pad_input(self, x):
        n, f = x.shape
        return jnp.zeros((self.n_pad, self.f_in_pad), x.dtype).at[:n, :f].set(x)

    def __call__(self, x):
        h = self._pad_input(x).astype(jnp.bfloat16)
        n_layers = len(self.weights_p)
        for li in range(n_layers):
            last = li == n_layers - 1
            h = gcn_layer(self.a_norm_p, h, self.weights_p[li], self.biases_p[li],
                          apply_tanh=not last,
                          out_dtype=jnp.float32 if last else jnp.bfloat16,
                          tm=self.tm, tk=self.tk, tm_big=self.tm_big,
                          tanh_in_bf16=self.tanh_in_bf16, vmem_cap=self.vmem_cap)
        return h[:self.num_nodes, :self.out_features]


# ------------------------------ reference ---------------------------------------
# Mirrors the kernel's bf16 operand / f32 accumulation / tanh-dtype policy so the
# comparison is apples-to-apples (same quantized inputs, same matmul order).

def reference_forward(model, x):
    a = model.a_norm_p
    h = model._pad_input(x).astype(jnp.bfloat16)
    n_layers = len(model.weights_p)
    for li in range(n_layers):
        w = model.weights_p[li]
        b = model.biases_p[li]
        last = li == n_layers - 1
        if w.shape[0] <= w.shape[1]:
            t = jnp.dot(a, h, preferred_element_type=jnp.float32).astype(jnp.bfloat16)
            y = jnp.dot(t, w, preferred_element_type=jnp.float32) + b[None, :]
        else:
            t = jnp.dot(h, w, preferred_element_type=jnp.float32).astype(jnp.bfloat16)
            y = jnp.dot(a, t, preferred_element_type=jnp.float32) + b[None, :]
        if not last:
            if model.tanh_in_bf16:
                y = jnp.tanh(y.astype(jnp.bfloat16)).astype(jnp.float32)
            else:
                y = jnp.tanh(y)
            h = y.astype(jnp.bfloat16)
        else:
            h = y
    return h[:model.num_nodes, :model.out_features]


# --------------------------------- main ------------------------------------------

if __name__ == "__main__":
    N = 16            # number of graph nodes
    IN_FEATURES = 8
    WIDTH = 256       # padded dims: 128->256 (fused), 256->256 (fused), 256->128 (transform-first)
    OUT_FEATURES = 4
    DEPTH = 2

    key = jax.random.PRNGKey(0)
    kx, _ = jax.random.split(key)

    # ring graph, both directions
    src = jnp.arange(N, dtype=jnp.int32)
    dst = (src + 1) % N
    edge_index = jnp.stack(
        [jnp.concatenate([src, dst]), jnp.concatenate([dst, src])], axis=0
    )

    x = jax.random.normal(kx, (N, IN_FEATURES), jnp.float32)

    model = GCNFlowModelPallas(edge_index, N, IN_FEATURES, OUT_FEATURES,
                               depth=DEPTH, width=WIDTH, seed=0)

    out = jax.block_until_ready(model(x))
    ref = reference_forward(model, x)

    assert out.shape == (N, OUT_FEATURES)
    assert jnp.allclose(out, ref, atol=2e-3, rtol=2e-3), "mismatch vs. JAX reference"

    print("KERNEL_OK")
</pallas_src>

<mosaic_0001>
module attributes {stable_mosaic.version = 11 : i64} {
  func.func @_agg_fused_kernel(%arg0: i32, %arg1: i32, %arg2: memref<8x16xbf16, #tpu.memory_space<vmem>>, %arg3: memref<16x128xbf16, #tpu.memory_space<vmem>>, %arg4: memref<128x256xbf16, #tpu.memory_space<vmem>>, %arg5: memref<1x256xf32, #tpu.memory_space<vmem>>, %arg6: memref<8x256xbf16, #tpu.memory_space<vmem>>, %arg7: memref<8x128xf32, #tpu.memory_space<vmem>>) attributes {dimension_semantics = [#tpu.dimension_semantics<parallel>, #tpu.dimension_semantics<arbitrary>], iteration_bounds = array<i64: 2, 1>, scalar_prefetch = 0 : i64, scratch_operands = 1 : i64, tpu.core_type = #tpu.core_type<tc>, window_params = [{transform_indices = @transform_0, window_bounds = array<i64: 8, 16>}, {transform_indices = @transform_1, window_bounds = array<i64: 16, 128>}, {pipeline_mode = #tpu.pipeline_mode<synchronous>, transform_indices = @transform_2, window_bounds = array<i64: 128, 256>}, {pipeline_mode = #tpu.pipeline_mode<synchronous>, transform_indices = @transform_3, window_bounds = array<i64: 1, 256>}, {transform_indices = @transform_4, window_bounds = array<i64: 8, 256>}]} {
    %c0_i32 = arith.constant 0 : i32
    %0 = arith.cmpi eq, %arg1, %c0_i32 : i32
    %1 = arith.extui %0 : i1 to i32
    %c0_i32_0 = arith.constant 0 : i32
    %2 = arith.cmpi ne, %1, %c0_i32_0 : i32
    scf.if %2 {
      %cst_10 = arith.constant 0.000000e+00 : f32
      %12 = vector.broadcast %cst_10 : f32 to vector<8x128xf32>
      %c0_11 = arith.constant 0 : index
      %c0_12 = arith.constant 0 : index
      %13 = vector.load %arg7[%c0_11, %c0_12] : memref<8x128xf32, #tpu.memory_space<vmem>>, vector<8x128xf32>
      tpu.vector_store %arg7[%c0_11, %c0_12], %12 {strides = array<i32>} : memref<8x128xf32, #tpu.memory_space<vmem>>, vector<8x128xf32>,
    } else {
    }
    %c0 = arith.constant 0 : index
    %c0_1 = arith.constant 0 : index
    %3 = vector.load %arg7[%c0, %c0_1] : memref<8x128xf32, #tpu.memory_space<vmem>>, vector<8x128xf32>
    %c0_2 = arith.constant 0 : index
    %c0_3 = arith.constant 0 : index
    %4 = vector.load %arg2[%c0_2, %c0_3] : memref<8x16xbf16, #tpu.memory_space<vmem>>, vector<8x16xbf16>
    %c0_4 = arith.constant 0 : index
    %c0_5 = arith.constant 0 : index
    %5 = vector.load %arg3[%c0_4, %c0_5] : memref<16x128xbf16, #tpu.memory_space<vmem>>, vector<16x128xbf16>
    %cst = arith.constant dense<0.000000e+00> : vector<8x128xf32>
    %6 = tpu.matmul %4, %5, %cst {dimension_numbers = #tpu.dot_dimension_numbers<[1], [0], [0], [1], [0, 0, 1, 1], [], []>} : vector<8x16xbf16>, vector<16x128xbf16>, vector<8x128xf32> -> vector<8x128xf32>
    %7 = arith.addf %3, %6 : vector<8x128xf32>
    %c0_6 = arith.constant 0 : index
    %c0_7 = arith.constant 0 : index
    %8 = vector.load %arg7[%c0_6, %c0_7] : memref<8x128xf32, #tpu.memory_space<vmem>>, vector<8x128xf32>
    tpu.vector_store %arg7[%c0_6, %c0_7], %7 {strides = array<i32>} : memref<8x128xf32, #tpu.memory_space<vmem>>, vector<8x128xf32>,
    %c0_i32_8 = arith.constant 0 : i32
    %9 = arith.cmpi eq, %arg1, %c0_i32_8 : i32
    %10 = arith.extui %9 : i1 to i32
    %c0_i32_9 = arith.constant 0 : i32
    %11 = arith.cmpi ne, %10, %c0_i32_9 : i32
    scf.if %11 {
      %c0_10 = arith.constant 0 : index
      %c0_11 = arith.constant 0 : index
      %12 = vector.load %arg7[%c0_10, %c0_11] : memref<8x128xf32, #tpu.memory_space<vmem>>, vector<8x128xf32>
      %13 = arith.truncf %12 : vector<8x128xf32> to vector<8x128xbf16>
      %c0_12 = arith.constant 0 : index
      %c0_13 = arith.constant 0 : index
      %14 = vector.load %arg4[%c0_12, %c0_13] : memref<128x256xbf16, #tpu.memory_space<vmem>>, vector<128x256xbf16>
      %cst_14 = arith.constant dense<0.000000e+00> : vector<8x256xf32>
      %15 = tpu.matmul %13, %14, %cst_14 {dimension_numbers = #tpu.dot_dimension_numbers<[1], [0], [0], [1], [0, 0, 1, 1], [], []>} : vector<8x128xbf16>, vector<128x256xbf16>, vector<8x256xf32> -> vector<8x256xf32>
      %c0_15 = arith.constant 0 : index
      %c0_16 = arith.constant 0 : index
      %16 = vector.load %arg5[%c0_15, %c0_16] : memref<1x256xf32, #tpu.memory_space<vmem>>, vector<1x256xf32>
      %17 = vector.broadcast %16 : vector<1x256xf32> to vector<8x256xf32>
      %18 = arith.addf %15, %17 : vector<8x256xf32>
      %19 = arith.truncf %18 : vector<8x256xf32> to vector<8x256xbf16>
      %20 = math.tanh %19 : vector<8x256xbf16>
      %21 = arith.extf %20 : vector<8x256xbf16> to vector<8x256xf32>
      %22 = arith.truncf %21 : vector<8x256xf32> to vector<8x256xbf16>
      %c0_17 = arith.constant 0 : index
      %c0_18 = arith.constant 0 : index
      %23 = vector.load %arg6[%c0_17, %c0_18] : memref<8x256xbf16, #tpu.memory_space<vmem>>, vector<8x256xbf16>
      tpu.vector_store %arg6[%c0_17, %c0_18], %22 {strides = array<i32>} : memref<8x256xbf16, #tpu.memory_space<vmem>>, vector<8x256xbf16>,
    } else {
    }
    return
  }
  func.func @transform_0(%arg0: i32, %arg1: i32) -> (i32, i32) {
    %c0_i32 = arith.constant 0 : i32
    return %arg0, %arg1 : i32, i32
  }
  func.func @transform_1(%arg0: i32, %arg1: i32) -> (i32, i32) {
    %c0_i32 = arith.constant 0 : i32
    %c0_i32_0 = arith.constant 0 : i32
    return %arg1, %c0_i32 : i32, i32
  }
  func.func @transform_2(%arg0: i32, %arg1: i32) -> (i32, i32) {
    %c0_i32 = arith.constant 0 : i32
    %c0_i32_0 = arith.constant 0 : i32
    %c0_i32_1 = arith.constant 0 : i32
    return %c0_i32, %c0_i32_0 : i32, i32
  }
  func.func @transform_3(%arg0: i32, %arg1: i32) -> (i32, i32) {
    %c0_i32 = arith.constant 0 : i32
    %c0_i32_0 = arith.constant 0 : i32
    %c0_i32_1 = arith.constant 0 : i32
    return %c0_i32, %c0_i32_0 : i32, i32
  }
  func.func @transform_4(%arg0: i32, %arg1: i32) -> (i32, i32) {
    %c0_i32 = arith.constant 0 : i32
    %c0_i32_0 = arith.constant 0 : i32
    return %arg0, %c0_i32 : i32, i32
  }
}

</mosaic_0001>

<bundles_post_ra>
// kernel: tpu_custom_call.1
= control target key start
LH: loop header
LB: loop body
LE: loop exit
PB: predicated region body
PF: predicated region fallthrough
CT: control target
= control target key end

     0   :  { %9 = vsyncpa [#allocation4], 0  ;;  %s1153_s0 = inlined_call_operand.hbm [shape: bf16[16,16], index: 0, kind: input, shape index: {}]   ;;  %s1154_s1 = inlined_call_operand.hbm [shape: bf16[16,128], index: 1, kind: input, shape index: {}]   ;;  %s1155_s2 = inlined_call_operand.hbm [shape: bf16[128,256], index: 2, kind: input, shape index: {}]   ;;  %s1156_s3 = inlined_call_operand.vmem [shape: f32[1,256], index: 3, kind: input, shape index: {}]   ;;  %s1157_s4 = inlined_call_operand.hbm [shape: bf16[16,256], index: 4, kind: output, shape index: {}]  }
   0x1   :  { %11 = vsyncpa [#allocation4 + $0x1], 0 }
   0x2   :  { %12 = vsyncpa [#allocation7], 0 }
   0x3   :  { %13 = vsyncpa [#allocation5], 0 }
   0x4   :  { %15 = vsyncpa [#allocation5 + $0x1], 0  ;;  %s975_s15 = smov 0   ;;  %s977_s16 = smov 0  }
   0x5   :  { %s979_s17 = smov 0   ;;  %s981_s18 = smov 0  }
   0x6   :  { %s983_s19 = smov 0   ;;  %s985_s20 = smov 0  }
   0x7 LB: > { %s608_s21 = sadd.s32 4294967295, %s937_s20   ;;  %s609_s22 = sadd.s32 4294967294, %s937_s20   ;;  %s937_s20 = sphi %s985_s20, %s21_s20   ;;  %s933_s19 = sphi %s983_s19, %s1177_s19   ;;  %s929_s18 = sphi %s981_s18, %s1176_s18   ;;  %s925_s17 = sphi %s979_s17, %s1175_s17   ;;  %s921_s16 = sphi %s977_s16, %s1174_s16   ;;  %s917_s15 = sphi %s975_s15, %s1173_s15  }
   0x8   : > { %p55_p0 = scmp.ne.s32.totalorder %s921_s16, %s917_s15  ;;  %p1009_p1 = scmp.eq.s32.totalorder %s608_s21, 0 }
   0x9   : > { %p1013_p2 = scmp.eq.s32.totalorder %s608_s21, 1  ;;  %p153_p3 = scmp.eq.s32.totalorder %s609_s22, 1 }
   0xa   : > { %s1161_s23 = scalar_select %p1009_p1, 1, 0 }
   0xb   : > { %p1019_p4 = por %p1009_p1, %p55_p0  ;;  %p610_p5 = scmp.ge.s32.totalorder %s937_s20, 1 }
   0xc   : > { %p1024_p6 = por %p153_p3, %p55_p0  ;;  %p160_p7 = scmp.lt.s32.totalorder %s937_s20, 3 }
   0xd   : > { %s1163_s25 = scalar_select %p1019_p4, 1, 0 }
   0xe   : > { %s1164_s26 = scalar_select %p1024_p6, 1, 0 }
   0xf   : > { %p1029_p8 = pnand %p610_p5, %p160_p7  ;;  %s939_s28 = smov [#allocation6]  }
  0x10   : > { %s175_s29 = sshll.u32 %s939_s28, 4  ;;  %s940_s5 = smov [#allocation8]   ;;  %s176_s29 = int_to_ptr.vmem [resolvable:$true] %s175_s29 }
  0x11   : > { %p666_p9 = pneg %p1029_p8  ;;  %s188_s6 = sshll.u32 %s940_s5, 4  ;;  %s189_s6 = int_to_ptr.vmem [resolvable:$true] %s188_s6 }
  0x12   : > { %s784_s7 = scalar_lea.vmem %s176_s29, 128  ;;  %p792_p5 = scmp.lt.s32.totalorder %s176_s29, %s176_s29 }
  0x13   : > { %p1038_p11 = pnand %p666_p9, %p1009_p1  ;;  %p785_p13 = scmp.ne.s32.totalorder %s176_s29, %s784_s7 }
  0x14   : > { %p793_p7 = scmp.lt.s32.totalorder %s784_s7, %s784_s7 }
  0x15   : > { %p775_p12 = pneg %p1038_p11 }
  0x16   : > { %p794_p10 = por %p793_p7, %p792_p5 }
  0x17   : > { %p787_p0 = pnand %p785_p13, %p775_p12 }
  0x19   : > { %p788_p3 = pneg %p787_p0 }
  0x1b   : > { %p795_p9 = pnand %p794_p10, %p788_p3 }
  0x1d   : > { %798 = shalt.err (!%p795_p9)
}
  0x1e   : > { %s941_s8 = smov 64   ;;  %s942_s9 = smov 4  }
  0x1f   : > { %669 = dma.hbm_to_vmem [thread:$0]  (!%p1038_p11), %s1154_s1, 128, %s176_s29, [#allocation7], %s941_s8, %s941_s8, %s942_s9  }
  0x20   : > { %s810_s12 = scalar_lea.vmem %s189_s6, 2048  ;;  %p818_p1 = scmp.lt.s32.totalorder %s189_s6, %s189_s6 }
  0x21   : > { %p811_p6 = scmp.ne.s32.totalorder %s189_s6, %s810_s12  ;;  %p819_p4 = scmp.lt.s32.totalorder %s810_s12, %s810_s12 }
  0x23   : > { %p813_p13 = pnand %p811_p6, %p775_p12  ;;  %p820_p5 = por %p819_p4, %p818_p1 }
  0x25   : > { %p814_p0 = pneg %p813_p13 }
  0x27   : > { %p821_p10 = pnand %p820_p5, %p814_p0 }
  0x29   : > { %824 = shalt.err (!%p821_p10)
}
  0x2a   : > { %s943_s13 = smov 128   ;;  %s944_s14 = smov 8  }
  0x2b   : > { %672 = dma.hbm_to_vmem [thread:$0]  (!%p1038_p11), %s1155_s2, 2048, %s189_s6, [#allocation7], %s943_s13, %s943_s13, %s944_s14  }
  0x2c   : > { %s33_s28 = sadd.s32 1, %s933_s19  ;;  %s42_s29 = sadd.s32 1, %s925_s17 }
  0x2d   : > { %p35_p1 = scmp.ge.s32.totalorder %s33_s28, 2  ;;  %p49_p4 = scmp.ne.s32.totalorder %s925_s17, %s921_s16 }
  0x2e   : > { %p50_p6 = scmp.eq.s32.totalorder %s937_s20, 0  ;;  %p683_p12 = scmp.lt.s32.totalorder %s937_s20, 2 }
  0x2f   : > { %s1179_s28 = smov (%p35_p1, %s33_s28), 0  ;;  %p1070_p7 = por %p1013_p2, %p49_p4 }
  0x30   : > { %p51_p3 = por %p50_p6, %p49_p4  ;;  %s37_s30 = ssub.s32 %s933_s19, %s1179_s28 }
  0x31   : > { %s205_s7 = sand.u32 1, %s925_s17   ;;  %p40_p9 = scmp.eq.s32.totalorder %s37_s30, 0 }
  0x32   : > { %s614_s6 = sshll.u32 %s205_s7, 2  ;;  %s615_s8 = sshll.u32 %s933_s19, 6 }
  0x33   : > { %s1079_s9 = scalar_select %p40_p9, %s925_s17, %s42_s29  }
  0x34   : > { %s215_s12 = scalar_lea.hbm %s1153_s0, %s615_s8  ;;  %s209_s13 = scalar_lea.vmem [#allocation3], %s614_s6 }
  0x35   : > { %s217_s14 = sshll.u32 %s209_s13, 4  ;;  %p1086_p11 = pnand %p683_p12, %p51_p3  ;;  %s218_s14 = int_to_ptr.vmem [resolvable:$true] %s217_s14 }
  0x36   : > { %s206_s21 = scalar_lea.sflag [#allocation4], %s205_s7  ;;  %s838_s22 = scalar_lea.vmem %s218_s14, 64 }
  0x37   : > { %p827_p2 = pneg %p1086_p11  ;;  %p839_p13 = scmp.ne.s32.totalorder %s218_s14, %s838_s22 }
  0x38   : > { %s945_s29 = smov [#allocation3]  }
  0x39   : > { %p841_p0 = pnand %p839_p13, %p827_p2  ;;  %s843_s30 = sshll.u32 %s945_s29, 4  ;;  %s844_s30 = int_to_ptr.vmem [resolvable:$false] %s843_s30 }
  0x3a   : > { %s845_s8 = scalar_lea.vmem %s844_s30, 128  ;;  %p846_p10 = scmp.lt.s32.totalorder %s218_s14, %s844_s30 }
  0x3b   : > { %p842_p5 = pneg %p841_p0  ;;  %p847_p1 = scmp.lt.s32.totalorder %s845_s8, %s838_s22 }
  0x3d   : > { %p848_p4 = por %p847_p1, %p846_p10 }
  0x3f   : > { %p849_p6 = pnand %p848_p4, %p842_p5 }
  0x41   : > { %852 = shalt.err (!%p849_p6)
}
  0x42   : > { %676 = dma.hbm_to_vmem [thread:$0]  (!%p1086_p11), %s215_s12, 64, %s218_s14, %s206_s21  }
  0x43   : > { %226 = sbr.rel (%p1029_p8) target bundleno = 505 (0x1f9), region = 36  ;;  %s1097_s7 = sand.u32 (!%p1029_p8), 1, %s921_s16  }
  0x44   : > { %s617_s6 = sshll.u32 (!%p1029_p8), %s1097_s7, 2  ;;  %s229_s10 = scalar_lea.sflag (!%p1029_p8), [#allocation4], %s1097_s7 }
  0x45   : > { %s232_s11 = scalar_lea.vmem (!%p1029_p8), [#allocation3], %s617_s6  ;;  %p1169_p12 = scmp.ne.s32.totalorder (!%p1029_p8), %s1163_s25, 0 }
  0x48   : > { %904 = dma.done.wait (%p1169_p12), %s229_s10, 64  }
  0x49   : > { %906 = vsyncadd (%p1169_p12), %s229_s10, 4294967232  ;;  %p1170_p3 = scmp.ne.s32.totalorder %s1161_s23, 0 }
  0x4b   : > { %908 = dma.done.wait (%p1170_p3), [#allocation7], 2176  }
  0x4c   : > { %910 = vsyncadd (%p1170_p3), [#allocation7], 4294965120  ;;  %v946_v0 = vmov 0.0   ;;  %vm947_vm0 = vmmov 0   ;;  %v744_v1 = vld [vmem:[#allocation6] sm:$0xff]   ;;  %vm282_vm1 = vcmask 130048   ;;  %v351_v25 = vlaneseq }
  0x4d   : > { %648 = vmatprep.subr.bf16.mxu0 %v946_v0  ;;  %650 = vmatprep.mubr.msk.bf16.mxu0 %vm947_vm0, %v946_v0  ;;  %v273_v2 = vld [vmem:[%s232_s11] sm:$0xf]  ;;  %v748_v5 = vld [vmem:[#allocation8 + $0x64] ss:$8 sps:$4 sm:$0xff]   ;;  %v750_v6 = vld [vmem:[#allocation8 + $0x60] ss:$8 sps:$4 sm:$0xff]  }
  0x4e   : > { %649 = vmatpush3.bf16.msra.mxu0 %v744_v1  ;;  %v745_v3 = vld [vmem:[#allocation8 + $0x74] ss:$8 sps:$4 sm:$0xff]   ;;  %v747_v4 = vld [vmem:[#allocation8 + $0x70] ss:$8 sps:$4 sm:$0xff]   ;;  %v754_v9 = vld [vmem:[#allocation8 + $0x44] ss:$8 sps:$4 sm:$0xff]  }
  0x4f   : > { %441 = vmatprep.subr.bf16.mxu1 %v745_v3  ;;  %v751_v7 = vld [vmem:[#allocation8 + $0x54] ss:$8 sps:$4 sm:$0xff]   ;;  %v753_v8 = vld [vmem:[#allocation8 + $0x50] ss:$8 sps:$4 sm:$0xff]   ;;  %v756_v10 = vld [vmem:[#allocation8 + $0x40] ss:$8 sps:$4 sm:$0xff]  }
  0x50   : > { %442 = vmatpush1.bf16.msra.mxu1 %v747_v4  ;;  %v757_v11 = vld [vmem:[#allocation8 + $0x34] ss:$8 sps:$4 sm:$0xff]   ;;  %v759_v12 = vld [vmem:[#allocation8 + $0x30] ss:$8 sps:$4 sm:$0xff]   ;;  %v760_v13 = vld [vmem:[#allocation8 + $0x24] ss:$8 sps:$4 sm:$0xff]  }
  0x51   : > { %651 = vmatmul.mubr.msk.bf16.vlgmr.msra.gmra.mxu0 %vm282_vm1, %v273_v2  ;;  %443 = vmatprep.subr.bf16.mxu1 %v748_v5  ;;  %v762_v14 = vld [vmem:[#allocation8 + $0x20] ss:$8 sps:$4 sm:$0xff]   ;;  %v763_v15 = vld [vmem:[#allocation8 + $0x14] ss:$8 sps:$4 sm:$0xff]   ;;  %v765_v16 = vld [vmem:[#allocation8 + $0x10] ss:$8 sps:$4 sm:$0xff]  }
  0x52   : > { %v766_v17 = vld [vmem:[#allocation8 + $0x4] ss:$8 sps:$4 sm:$0xff]   ;;  %v768_v18 = vld [vmem:[#allocation8] ss:$8 sps:$4 sm:$0xff]   ;;  %v948_v19 = vmov 0   ;;  %v352_v26 = vshrl.u32 %v351_v25, 7 }
  0x53   : > { %473 = vmatprep.mubr.bf16.mxu1 %v948_v19  ;;  %v349_v28 = vld [vmem:[%s1156_s3] sm:$0x3]  ;;  %s620_s27 = sshll.u32 %s1097_s7, 3  ;;  %s645_s12 = sshll.u32 %s929_s18, 7 }
  0x54   : > { %444 = vmatpush1.bf16.msra.mxu1 %v750_v6  ;;  %v353_v27 = vsub.s32 0, %v352_v26  ;;  %v357_v29 = vsub.s32 1, %v352_v26  ;;  %s264_s13 = scalar_lea.vmem [#allocation9], %s620_s27  ;;  %s506_s22 = scalar_lea.hbm %s1157_s4, %s645_s12 }
  0x55   : > { %445 = vmatprep.subr.bf16.mxu1 %v751_v7  ;;  %s508_s14 = sshll.u32 %s264_s13, 4  ;;  %s494_s29 = scalar_lea.sflag [#allocation5], %s1097_s7  ;;  %s509_s14 = int_to_ptr.vmem [resolvable:$true] %s508_s14 }
  0x56   : > { %v354_v30 = vrot.slane %v349_v28, %v353_v27  ;;  %v358_v31 = vrot.slane %v349_v28, %v357_v29  ;;  %s853_s30 = scalar_lea.vmem %s509_s14, 128  ;;  %s949_s8 = smov [#allocation9]  }
  0x57   : > { %p854_p8 = scmp.ne.s32.totalorder %s509_s14, %s853_s30  ;;  %s857_s6 = sshll.u32 %s949_s8, 4  ;;  %s858_s6 = int_to_ptr.vmem [resolvable:$false] %s857_s6 }
  0x58   : > { %446 = vmatpush1.bf16.msra.mxu1 %v753_v8  ;;  %s859_s18 = scalar_lea.vmem %s858_s6, 256  ;;  %p860_p2 = scmp.lt.s32.totalorder %s509_s14, %s858_s6 }
  0x59   : > { %447 = vmatprep.subr.bf16.mxu1 %v754_v9  ;;  %p855_p9 = pnand %p854_p8, %p1070_p7  ;;  %p861_p13 = scmp.lt.s32.totalorder %s859_s18, %s853_s30 }
  0x5b   : > { %p856_p11 = pneg %p855_p9  ;;  %p862_p0 = por %p861_p13, %p860_p2 }
  0x5c   : > { %448 = vmatpush1.bf16.msra.mxu1 %v756_v10 }
  0x5d   : > { %449 = vmatprep.subr.bf16.mxu1 %v757_v11  ;;  %p863_p5 = pnand %p862_p0, %p856_p11 }
  0x60   : > { %450 = vmatpush1.bf16.msra.mxu1 %v759_v12 }
  0x61   : > { %451 = vmatprep.subr.bf16.mxu1 %v760_v13 }
  0x64   : > { %452 = vmatpush1.bf16.msra.mxu1 %v762_v14 }
  0x65   : > { %453 = vmatprep.subr.bf16.mxu1 %v763_v15 }
  0x68   : > { %454 = vmatpush1.bf16.msra.mxu1 %v765_v16 }
  0x69   : > { %455 = vmatprep.subr.bf16.mxu1 %v766_v17 }
  0x6c   : > { %456 = vmatpush1.bf16.msra.mxu1 %v768_v18 }
 0x111   : > { %v320_v20 = vpop.f32.mrf.mxu0 }
 0x112   : > { %v332_v21 = vpack.c.bf16 %v320_v20, %v320_v20 }
 0x113   : > { %v652_v22 = vpop.f32.mrf.mxu0 }
 0x114   : > { %474 = vmatmul.mubr.bf16.vlgmr.msra.gmra.mxu1 %v332_v21 }
 0x115   : > { %v323_v23 = vpop.f32.mrf.mxu0 }
 0x117   : > { %v653_v24 = vpop.f32.mrf.mxu0 }
 0x1d4   : > { %v475_v32 = vpop.f32.mrf.mxu1 }
 0x1d5   : > { %v476_v33 = vadd.f32 %v475_v32, %v354_v30 }
 0x1d6   : > { %v477_v34 = vpop.f32.mrf.mxu1 }
 0x1d7   : > { %v482_v35 = vpack.c.bf16 %v476_v33, %v476_v33  ;;  %v478_v36 = vadd.f32 %v477_v34, %v358_v31 }
 0x1d8   : > { %v479_v37 = vpop.f32.mrf.mxu1 }
 0x1d9   : > { %v483_v38 = vpack.c.bf16 %v478_v36, %v478_v36  ;;  %769 = vtanh.bf16 %v482_v35 }
 0x1da   : > { %v480_v39 = vpop.f32.mrf.mxu1 }
 0x1db   : > { %771 = vtanh.bf16 %v483_v38 }
 0x1e7   : > { %v770_v40 = vpop.eup %769 }
 0x1e9   : > { %v772_v41 = vpop.eup %771 }
 0x1ea   : > { %v639_v42 = vcombine.low %v770_v40, %v772_v41 }
 0x1ec   : > { %492 = vst [vmem:[%s264_s13] sm:$0xff] %v639_v42 }
 0x1ed   : > { %866 = shalt.err (!%p863_p5)
}
 0x1ee   : > { %s867_s10 = scalar_lea.hbm %s506_s22, 128  ;;  %s871_s23 = scalar_lea.hbm %s1157_s4, 256 }
 0x1ef   : > { %p868_p10 = scmp.ne.s32.totalorder %s506_s22, %s867_s10  ;;  %p872_p6 = scmp.lt.s32.totalorder %s506_s22, %s1157_s4 }
 0x1f0   : > { %p873_p12 = scmp.lt.s32.totalorder %s871_s23, %s867_s10 }
 0x1f1   : > { %p869_p1 = pnand %p868_p10, %p1070_p7 }
 0x1f2   : > { %p874_p3 = por %p873_p12, %p872_p6 }
 0x1f3   : > { %p870_p4 = pneg %p869_p1 }
 0x1f5   : > { %p875_p8 = pnand %p874_p3, %p870_p4 }
 0x1f7   : > { %878 = shalt.err (!%p875_p8)
}
 0x1f8   : > { %664 = dma.vmem_to_hbm [thread:$0]  (%p1070_p7), %s509_s14, 128, %s506_s22, %s494_s29  }
 0x1f9 PF: > { %s520_s12 = sand.u32 1, %s917_s15   ;;  %p1171_p9 = scmp.ne.s32.totalorder %s1164_s26, 0 }
 0x1fa   : > { %p1172_p11 = scmp.ge.s32.totalorder %s937_s20, 2  ;;  %s521_s13 = scalar_lea.sflag [#allocation5], %s520_s12 }
 0x1fc   : > { %p678_p2 = pnand %p1172_p11, %p1171_p9 }
 0x1fe   : > { %p679_p13 = pneg %p678_p2 }
 0x200   : > { %912 = dma.done.wait (%p679_p13), %s521_s13, 128  }
 0x201   : > { %914 = vsyncadd (%p679_p13), %s521_s13, 4294967168  ;;  %s21_s20 = sadd.s32 1, %s937_s20   ;;  %s1173_s15 = smov %s921_s16 }
 0x202   : > { %p18_p0 = scmp.ge.s32.totalorder %s21_s20, 4   ;;  %s1174_s16 = smov %s925_s17 }
 0x203   : > { %s1175_s17 = smov %s1079_s9  ;;  %s1176_s18 = smov %s933_s19 }
 0x204   : > { %s1177_s19 = smov %s1179_s28  ;;  %20 = sbr.rel (!%p18_p0) target bundleno = 7 (0x7), region = 98 }
 0x209   :  { %526 = vsyncpa [#allocation4], 1 }
 0x20a   :  { %528 = vsyncpa [#allocation4 + $0x1], 1 }
 0x20b   :  { %529 = vsyncpa [#allocation7], 1 }
 0x20c   :  { %530 = vsyncpa [#allocation5], 1 }
 0x20d   :  { %532 = vsyncpa [#allocation5 + $0x1], 1 }

</bundles_post_ra>
